<compile_context>
chip_gen: v5e
topology: v5e:2x2
jax: 0.10.0
libtpu: 0.0.40
codegen_flags: <defaults>
</compile_context>

<pallas_src>
from functools import partial

import jax
import jax.numpy as jnp
from jax.experimental import pallas as pl
from jax.experimental.pallas import tpu as pltpu

EPS = 1e-5


def _logreg_kernel(xt_ref, w_ref, b_ref, o_ref, *, n_in):
    """xt_ref: (n_in, B)   f32 VMEM -- features on sublanes, batch on lanes
       w_ref : (n_in+1, 1) f32 VMEM -- gamma-folded linear weights
       b_ref : (1, 1)      f32 SMEM -- beta/bias folded scalar
       o_ref : (1, B)      f32 VMEM -- lane-dense sigmoid output row
    """
    xt = xt_ref[...]                                         # (n_in, B)

    # diff feature built from the last two feature rows (pure VPU work).
    diff = xt[n_in - 2:n_in - 1, :] - xt[n_in - 1:n_in, :]   # (1, B)

    # --- BatchNorm1d (training mode: batch mean, biased variance) --------
    # Batch is the lane axis, so per-feature stats are lane reductions.
    mean_x = jnp.mean(xt, axis=1, keepdims=True)             # (n_in, 1)
    var_x = jnp.mean((xt - mean_x) ** 2, axis=1, keepdims=True)
    xhat = (xt - mean_x) * jax.lax.rsqrt(var_x + EPS)        # (n_in, B)

    mean_d = jnp.mean(diff, axis=1, keepdims=True)           # (1, 1)
    var_d = jnp.mean((diff - mean_d) ** 2, axis=1, keepdims=True)
    dhat = (diff - mean_d) * jax.lax.rsqrt(var_d + EPS)      # (1, B)

    # --- Linear (affine folded into w_eff / b_eff) + sigmoid --------------
    # VPU multiply + sublane reduce instead of a padded (B,4)@(4,1) MXU dot.
    w_main = w_ref[:n_in, :]                                 # (n_in, 1)
    w_diff = w_ref[n_in:, :]                                 # (1, 1)
    z = (jnp.sum(xhat * w_main, axis=0, keepdims=True)       # (1, B)
         + dhat * w_diff
         + b_ref[0, 0])
    o_ref[...] = 1.0 / (1.0 + jnp.exp(-z))


def logistic_regression_forward(x, gamma, beta, w, b):
    """x: (B, n_inputs) float32. Returns (B, 1) float32 sigmoid probabilities."""
    x = x.astype(jnp.float32)
    B, n_in = x.shape
    F = n_in + 1

    # Feature-major layout: features on sublanes, batch on lanes.
    xt = x.T                                                 # (n_in, B)

    # Fold the BatchNorm affine (gamma, beta) into the Linear layer.
    w_row = w.reshape(F).astype(jnp.float32)                 # torch weight is (1, F)
    gamma_f = gamma.reshape(F).astype(jnp.float32)
    beta_f = beta.reshape(F).astype(jnp.float32)
    w_eff = (gamma_f * w_row).reshape(F, 1)                  # (F, 1)
    b_eff = (jnp.dot(beta_f, w_row) + b.reshape(())).reshape(1, 1).astype(jnp.float32)

    # Single block (whole problem fits in VMEM trivially): no grid, no
    # pipeline prologue/epilogue.
    # TODO(synk): for very large B, tile the lane (batch) axis with a grid and
    # two-pass / sum+sumsq batch-norm stats so padded rows never enter the mean.
    out_row = pl.pallas_call(
        partial(_logreg_kernel, n_in=n_in),
        out_shape=jax.ShapeDtypeStruct((1, B), jnp.float32),
        in_specs=[
            pl.BlockSpec(memory_space=pltpu.MemorySpace.VMEM),   # xt
            pl.BlockSpec(memory_space=pltpu.MemorySpace.VMEM),   # w_eff
            pl.BlockSpec(memory_space=pltpu.MemorySpace.SMEM),   # b_eff (scalar)
        ],
        out_specs=pl.BlockSpec(memory_space=pltpu.MemorySpace.VMEM),
    )(xt, w_eff, b_eff)

    return out_row.reshape(B, 1)


def reference_forward(x, gamma, beta, w, b):
    """Pure-JAX reference mirroring the PyTorch module (training-mode BN)."""
    x = x.astype(jnp.float32)
    diff = x[:, -2] - x[:, -1]
    xs = jnp.concatenate([x, diff[:, None]], axis=1)
    mean = jnp.mean(xs, axis=0, keepdims=True)
    var = jnp.mean((xs - mean) ** 2, axis=0, keepdims=True)
    y = (xs - mean) / jnp.sqrt(var + EPS) * gamma.reshape(1, -1) + beta.reshape(1, -1)
    z = y @ w.reshape(-1, 1) + b.reshape(1, 1)
    return jax.nn.sigmoid(z)


if __name__ == "__main__":
    n_inputs = 3
    F = n_inputs + 1
    B = 128   # batch on the lane axis -> full 128-lane utilization

    key = jax.random.PRNGKey(0)
    kx, kg, kb, kw, kbias = jax.random.split(key, 5)

    x = jax.random.normal(kx, (B, n_inputs), dtype=jnp.float32)

    # Deterministic synthetic parameters (BatchNorm1d affine + Linear).
    gamma = 1.0 + 0.1 * jax.random.normal(kg, (F,), dtype=jnp.float32)
    beta = 0.1 * jax.random.normal(kb, (F,), dtype=jnp.float32)
    w = jax.random.normal(kw, (1, F), dtype=jnp.float32) / jnp.sqrt(F)  # torch Linear weight layout (out, in)
    b = 0.1 * jax.random.normal(kbias, (1,), dtype=jnp.float32)

    out = logistic_regression_forward(x, gamma, beta, w, b)
    out = jax.block_until_ready(out)

    ref = reference_forward(x, gamma, beta, w, b)
    assert out.shape == (B, 1), out.shape
    assert jnp.allclose(out, ref, atol=1e-5, rtol=1e-4), (out, ref)

    print("KERNEL_OK")
</pallas_src>

<mosaic_0001>
module attributes {stable_mosaic.version = 11 : i64} {
  func.func @_logreg_kernel(%arg0: memref<3x128xf32, #tpu.memory_space<vmem>>, %arg1: memref<4x1xf32, #tpu.memory_space<vmem>>, %arg2: memref<1x1xf32, #tpu.memory_space<smem>>, %arg3: memref<1x128xf32, #tpu.memory_space<vmem>>) attributes {dimension_semantics = [], scalar_prefetch = 0 : i64, scratch_operands = 0 : i64, tpu.core_type = #tpu.core_type<tc>} {
    %c0 = arith.constant 0 : index
    %c0_0 = arith.constant 0 : index
    %0 = vector.load %arg0[%c0, %c0_0] : memref<3x128xf32, #tpu.memory_space<vmem>>, vector<3x128xf32>
    %1 = vector.extract_strided_slice %0 {offsets = [1, 0], sizes = [1, 128], strides = [1, 1]} : vector<3x128xf32> to vector<1x128xf32>
    %2 = vector.extract_strided_slice %0 {offsets = [2, 0], sizes = [1, 128], strides = [1, 1]} : vector<3x128xf32> to vector<1x128xf32>
    %3 = arith.subf %1, %2 : vector<1x128xf32>
    %cst = arith.constant dense<0.000000e+00> : vector<3xf32>
    %4 = vector.multi_reduction <add>, %0, %cst [1] : vector<3x128xf32> to vector<3xf32>
    %5 = vector.shape_cast %4 : vector<3xf32> to vector<3x1xf32>
    %cst_1 = arith.constant 1.280000e+02 : f32
    %6 = vector.broadcast %cst_1 : f32 to vector<3x1xf32>
    %7 = arith.divf %5, %6 : vector<3x1xf32>
    %8 = vector.broadcast %7 : vector<3x1xf32> to vector<3x128xf32>
    %9 = arith.subf %0, %8 : vector<3x128xf32>
    %10 = arith.mulf %9, %9 : vector<3x128xf32>
    %cst_2 = arith.constant dense<0.000000e+00> : vector<3xf32>
    %11 = vector.multi_reduction <add>, %10, %cst_2 [1] : vector<3x128xf32> to vector<3xf32>
    %12 = vector.shape_cast %11 : vector<3xf32> to vector<3x1xf32>
    %cst_3 = arith.constant 1.280000e+02 : f32
    %13 = vector.broadcast %cst_3 : f32 to vector<3x1xf32>
    %14 = arith.divf %12, %13 : vector<3x1xf32>
    %15 = vector.broadcast %7 : vector<3x1xf32> to vector<3x128xf32>
    %16 = arith.subf %0, %15 : vector<3x128xf32>
    %cst_4 = arith.constant 9.99999974E-6 : f32
    %17 = vector.broadcast %cst_4 : f32 to vector<3x1xf32>
    %18 = arith.addf %14, %17 : vector<3x1xf32>
    %19 = math.rsqrt %18 : vector<3x1xf32>
    %20 = vector.broadcast %19 : vector<3x1xf32> to vector<3x128xf32>
    %21 = arith.mulf %16, %20 : vector<3x128xf32>
    %cst_5 = arith.constant dense<0.000000e+00> : vector<1xf32>
    %22 = vector.multi_reduction <add>, %3, %cst_5 [1] : vector<1x128xf32> to vector<1xf32>
    %23 = vector.shape_cast %22 : vector<1xf32> to vector<1x1xf32>
    %cst_6 = arith.constant 1.280000e+02 : f32
    %24 = vector.broadcast %cst_6 : f32 to vector<1x1xf32>
    %25 = arith.divf %23, %24 : vector<1x1xf32>
    %26 = vector.broadcast %25 : vector<1x1xf32> to vector<1x128xf32>
    %27 = arith.subf %3, %26 : vector<1x128xf32>
    %28 = arith.mulf %27, %27 : vector<1x128xf32>
    %cst_7 = arith.constant dense<0.000000e+00> : vector<1xf32>
    %29 = vector.multi_reduction <add>, %28, %cst_7 [1] : vector<1x128xf32> to vector<1xf32>
    %30 = vector.shape_cast %29 : vector<1xf32> to vector<1x1xf32>
    %cst_8 = arith.constant 1.280000e+02 : f32
    %31 = vector.broadcast %cst_8 : f32 to vector<1x1xf32>
    %32 = arith.divf %30, %31 : vector<1x1xf32>
    %33 = vector.broadcast %25 : vector<1x1xf32> to vector<1x128xf32>
    %34 = arith.subf %3, %33 : vector<1x128xf32>
    %cst_9 = arith.constant 9.99999974E-6 : f32
    %35 = vector.broadcast %cst_9 : f32 to vector<1x1xf32>
    %36 = arith.addf %32, %35 : vector<1x1xf32>
    %37 = math.rsqrt %36 : vector<1x1xf32>
    %38 = vector.broadcast %37 : vector<1x1xf32> to vector<1x128xf32>
    %39 = arith.mulf %34, %38 : vector<1x128xf32>
    %c0_10 = arith.constant 0 : index
    %c0_11 = arith.constant 0 : index
    %40 = vector.load %arg1[%c0_10, %c0_11] : memref<4x1xf32, #tpu.memory_space<vmem>>, vector<3x1xf32>
    %c3 = arith.constant 3 : index
    %c0_12 = arith.constant 0 : index
    %41 = vector.load %arg1[%c3, %c0_12] : memref<4x1xf32, #tpu.memory_space<vmem>>, vector<1x1xf32>
    %42 = vector.broadcast %40 : vector<3x1xf32> to vector<3x128xf32>
    %43 = arith.mulf %21, %42 : vector<3x128xf32>
    %cst_13 = arith.constant dense<0.000000e+00> : vector<128xf32>
    %44 = vector.multi_reduction <add>, %43, %cst_13 [0] : vector<3x128xf32> to vector<128xf32>
    %45 = vector.shape_cast %44 : vector<128xf32> to vector<1x128xf32>
    %46 = vector.broadcast %41 : vector<1x1xf32> to vector<1x128xf32>
    %47 = arith.mulf %39, %46 : vector<1x128xf32>
    %48 = arith.addf %45, %47 : vector<1x128xf32>
    %c0_14 = arith.constant 0 : index
    %c0_15 = arith.constant 0 : index
    %49 = memref.load %arg2[%c0_14, %c0_15] : memref<1x1xf32, #tpu.memory_space<smem>>
    %50 = vector.broadcast %49 : f32 to vector<1x128xf32>
    %51 = arith.addf %48, %50 : vector<1x128xf32>
    %cst_16 = arith.constant 0.000000e+00 : f32
    %52 = vector.broadcast %cst_16 : f32 to vector<1x128xf32>
    %53 = arith.subf %52, %51 : vector<1x128xf32>
    %54 = math.exp %53 : vector<1x128xf32>
    %cst_17 = arith.constant 1.000000e+00 : f32
    %55 = vector.broadcast %cst_17 : f32 to vector<1x128xf32>
    %56 = arith.addf %55, %54 : vector<1x128xf32>
    %cst_18 = arith.constant 1.000000e+00 : f32
    %57 = vector.broadcast %cst_18 : f32 to vector<1x128xf32>
    %58 = arith.divf %57, %56 : vector<1x128xf32>
    %c0_19 = arith.constant 0 : index
    %c0_20 = arith.constant 0 : index
    %59 = vector.load %arg3[%c0_19, %c0_20] : memref<1x128xf32, #tpu.memory_space<vmem>>, vector<1x128xf32>
    tpu.vector_store %arg3[%c0_19, %c0_20], %58 {strides = array<i32>} : memref<1x128xf32, #tpu.memory_space<vmem>>, vector<1x128xf32>,
    return
  }
}

</mosaic_0001>

<bundles_post_ra>
// kernel: tpu_custom_call.1
= control target key start
LH: loop header
LB: loop body
LE: loop exit
PB: predicated region body
PF: predicated region fallthrough
CT: control target
= control target key end

     0   :  { %vm21_vm0 = vcmask 1042432   ;;  %s220_s0 = inlined_call_operand.vmem [shape: f32[3,128], index: 0, kind: input, shape index: {}]   ;;  %s221_s1 = inlined_call_operand.vmem [shape: f32[4,1], index: 1, kind: input, shape index: {}]   ;;  %s222_s2 = inlined_call_operand.<no memory space> [shape: f32[1,1], index: 2, kind: input, shape index: {}]   ;;  %s223_s3 = inlined_call_operand.hbm [shape: f32[1,128], index: 3, kind: output, shape index: {}]  }
   0x1   :  { %v16_v0 = vld [vmem:[%s220_s0] sm:$0x7] }
   0x2   :  { %v22_v1 = vsel %vm21_vm0, %v16_v0, 0.0  ;;  %v18_v2 = vrot.slane %v16_v0, 1 }
   0x3   :  { %9 = vsyncpa [#allocation4], 0  ;;  %23 = vadd.xlane.f32.xlu0 %v22_v1  ;;  %vm51_vm1 = vcmask 1041409   ;;  %v177_v5 = vmov 128.0   ;;  %v74_v8 = vld [vmem:[%s221_s1] sm:$0x7]  ;;  %v98_v59 = vstv %s222_s2 }
   0x4   :  { %v20_v3 = vsub.f32 %v16_v0, %v18_v2  ;;  %141 = vrcp.f32 %v177_v5  ;;  %v178_v9 = vmov 0   ;;  %v75_v12 = vld [vmem:[%s221_s1 + $0x3] sm:$0x1]  ;;  %s179_s18 = smov [#allocation3]   ;;  %s127_s2 = sshll.u32 %s223_s3, 4  ;;  %s128_s2 = int_to_ptr.hbm [resolvable:$true] %s127_s2 }
   0x5   :  { %139 = vset.pattern.permute.xlu2 %v178_v9  ;;  %140 = vset.pattern.permute.xlu0 %v178_v9  ;;  %s125_s19 = sshll.u32 %s179_s18, 4  ;;  %s126_s19 = int_to_ptr.vmem [resolvable:$true] %s125_s19 }
   0x6   :  { %v52_v4 = vsel %vm51_vm1, %v20_v3, 0.0  ;;  %78 = vperm.xlu2 %139, %v74_v8  }
   0xa   :  { %v142_v6 = vpop.eup %141 }
   0xb   :  { %53 = vadd.xlane.f32.xlu0 %v52_v4  ;;  %v26_v7 = vmul.f32 128.0, %v142_v6  ;;  %vm30_vm2 = vweird.f32 %v142_v6 }
   0xd   :  { %v27_v10 = vsub.f32 1.0, %v26_v7 }
   0xe   :  { %91 = vperm.xlu2 %139, %v75_v12  }
   0xf   :  { %v28_v11 = vmul.f32 %v142_v6, %v27_v10 }
  0x11   :  { %v29_v13 = vadd.f32 %v142_v6, %v28_v11 }
  0x13   :  { %v31_v14 = vsel %vm30_vm2, %v142_v6, %v29_v13 }
  0x60   :  { %v79_v41 = vpop.permute.xlu2 %78 }
  0x68   :  { %v92_v52 = vpop.permute.xlu2 %91 }
  0x69   :  { %v93_v56 = vrot.slane %v92_v52, 7 }
  0x76   :  { %v24_v15 = vpop.xlane.xlu0 %23 }
  0x77   :  { %v32_v16 = vmul.f32 %v31_v14, %v24_v15 }
  0x79   :  { %v33_v17 = vsub.f32 %v16_v0, %v32_v16 }
  0x7b   :  { %v34_v18 = vmul.f32 %v33_v17, %v33_v17 }
  0x7d   :  { %v35_v19 = vsel %vm21_vm0, %v34_v18, 0.0 }
  0x7e   :  { %36 = vadd.xlane.f32.xlu1 %v35_v19  ;;  %v54_v20 = vpop.xlane.xlu0 %53 }
  0x7f   :  { %v55_v21 = vmul.f32 %v54_v20, %v31_v14 }
  0x81   :  { %v56_v22 = vsub.f32 %v20_v3, %v55_v21 }
  0x83   :  { %v57_v23 = vmul.f32 %v56_v22, %v56_v22 }
  0x85   :  { %v58_v24 = vsel %vm51_vm1, %v57_v23, 0.0 }
  0x86   :  { %59 = vadd.xlane.f32.xlu1 %v58_v24 }
  0xf1   :  { %v37_v25 = vpop.xlane.xlu1 %36 }
  0xf2   :  { %v38_v26 = vmul.f32 %v37_v25, %v31_v14 }
  0xf4   :  { %v39_v27 = vadd.f32 1e-05, %v38_v26 }
  0xf6   :  { %143 = vrsqrt.f32 %v39_v27  ;;  %vm46_vm4 = vweird.f32 %v39_v27 }
  0xf9   :  { %v60_v28 = vpop.xlane.xlu1 %59 }
  0xfa   :  { %v61_v29 = vmul.f32 %v60_v28, %v31_v14 }
  0xfc   :  { %v144_v30 = vpop.eup %143  ;;  %v62_v31 = vadd.f32 1e-05, %v61_v29 }
  0xfd   :  { %v41_v32 = vmul.f32 %v144_v30, %v39_v27  ;;  %vm47_vm3 = vweird.f32 %v144_v30 }
  0xfe   :  { %145 = vrsqrt.f32 %v62_v31  ;;  %vm48_vm5 = vmor %vm46_vm4, %vm47_vm3  ;;  %vm69_vm7 = vweird.f32 %v62_v31 }
  0xff   :  { %v42_v33 = vmul.f32 %v144_v30, %v41_v32 }
 0x101   :  { %v43_v34 = vmul.f32 0.5, %v42_v33 }
 0x103   :  { %v44_v35 = vsub.f32 1.5, %v43_v34 }
 0x104   :  { %v146_v36 = vpop.eup %145 }
 0x105   :  { %v64_v37 = vmul.f32 %v146_v36, %v62_v31  ;;  %v45_v38 = vmul.f32 %v144_v30, %v44_v35  ;;  %vm70_vm6 = vweird.f32 %v146_v36 }
 0x106   :  { %vm71_vm8 = vmor %vm69_vm7, %vm70_vm6 }
 0x107   :  { %v65_v39 = vmul.f32 %v146_v36, %v64_v37  ;;  %v49_v40 = vsel %vm48_vm5, %v144_v30, %v45_v38 }
 0x108   :  { %v50_v42 = vmul.f32 %v49_v40, %v33_v17 }
 0x109   :  { %v66_v43 = vmul.f32 0.5, %v65_v39 }
 0x10a   :  { %v81_v44 = vmul.f32 %v79_v41, %v50_v42 }
 0x10b   :  { %v67_v45 = vsub.f32 1.5, %v66_v43 }
 0x10c   :  { %v82_v46 = vsel %vm21_vm0, %v81_v44, 0.0 }
 0x10d   :  { %v83_v47 = vrot.slane %v82_v46, 4  ;;  %v68_v48 = vmul.f32 %v146_v36, %v67_v45 }
 0x10f   :  { %v84_v49 = vadd.f32 %v83_v47, %v82_v46  ;;  %v72_v50 = vsel %vm71_vm8, %v146_v36, %v68_v48 }
 0x110   :  { %v73_v54 = vmul.f32 %v72_v50, %v56_v22 }
 0x111   :  { %v85_v51 = vrot.slane %v84_v49, 2 }
 0x112   :  { %v95_v58 = vmul.f32 %v93_v56, %v73_v54 }
 0x113   :  { %v86_v53 = vadd.f32 %v85_v51, %v84_v49 }
 0x115   :  { %v87_v55 = vrot.slane %v86_v53, 1 }
 0x117   :  { %v88_v57 = vadd.f32 %v87_v55, %v86_v53 }
 0x119   :  { %v96_v60 = vadd.f32 %v95_v58, %v88_v57 }
 0x11b   :  { %v99_v61 = vadd.f32 %v98_v59, %v96_v60 }
 0x11d   :  { %v100_v62 = vsub.f32 0.0, %v99_v61 }
 0x11f   :  { %v101_v63 = vmul.f32 1.442695, %v100_v62 }
 0x121   :  { %147 = vpow2.f32 %v101_v63 }
 0x127   :  { %v148_v0 = vpop.eup %147 }
 0x128   :  { %v103_v1 = vadd.f32 1.0, %v148_v0 }
 0x12a   :  { %149 = vrcp.f32 %v103_v1  ;;  %v115_v5 = vand.u32 2147483648, %v103_v1  ;;  %v113_v7 = vand.u32 2147483647, %v103_v1  ;;  %vm109_vm10 = vweird.f32 %v103_v1 }
 0x12c   :  { %v116_v9 = vor.u32 1.1754944e-38, %v115_v5  ;;  %vm114_vm12 = vcmp.eq.f32.partialorder %v113_v7, 8.507059e+37 }
 0x130   :  { %v150_v2 = vpop.eup %149 }
 0x131   :  { %v105_v3 = vmul.f32 %v150_v2, %v103_v1  ;;  %vm110_vm9 = vweird.f32 %v150_v2 }
 0x132   :  { %vm111_vm11 = vmor %vm109_vm10, %vm110_vm9 }
 0x133   :  { %v106_v4 = vsub.f32 1.0, %v105_v3 }
 0x135   :  { %v107_v6 = vmul.f32 %v150_v2, %v106_v4 }
 0x137   :  { %v108_v8 = vadd.f32 %v150_v2, %v107_v6 }
 0x139   :  { %v112_v10 = vsel %vm111_vm11, %v150_v2, %v108_v8 }
 0x13a   :  { %v117_v11 = vsel %vm114_vm12, %v116_v9, %v112_v10 }
 0x13b   :  { %119 = vst [vmem:[#allocation3 - $0x1] sm:$0x2] %v117_v11 }
 0x13c   :  { %130 = dma.vmem_to_hbm [thread:$0]  %s126_s19, 16, %s128_s2, [#allocation4]  }
 0x13d   :  { %175 = dma.done.wait [#allocation4], 16  }
 0x13e   :  { %176 = vsyncadd [#allocation4], 4294967280 }
 0x13f   :  { %135 = vsyncpa [#allocation4], 1 }

</bundles_post_ra>
